<compile_context>
chip_gen: v7x
topology: tpu7x:2x2x1
jax: 0.10.0
libtpu: 0.0.40
codegen_flags: <defaults>
</compile_context>

<pallas_src>
import jax
import jax.numpy as jnp
from jax.experimental import pallas as pl
from jax.experimental.pallas import tpu as pltpu

_LANES = 128  # vreg lane width (last-dim quantum)


def _round_up(a: int, b: int) -> int:
    return ((a + b - 1) // b) * b


def _sublane_quantum(dtype) -> int:
    """Native sublane tile height: 8 (f32), 16 (bf16/f16), 32 (1-byte dtypes)."""
    return max(8, 32 // jnp.dtype(dtype).itemsize)


def _h_swish_kernel(x_ref, o_ref):
    x = x_ref[...]
    # h_sigmoid(x) = relu6(x + 3) / 6 ; h_swish(x) = x * h_sigmoid(x).
    # Weak-typed python constants keep the compute in the input dtype
    # (no silent bf16 -> f32 promotion on the HBM path).
    hs = jnp.clip(x + 3.0, 0.0, 6.0) * (1.0 / 6.0)
    o_ref[...] = (x * hs).astype(o_ref.dtype)


def _detect_generation() -> str:
    try:
        kind = jax.devices()[0].device_kind.lower()
    except Exception:
        return "unknown"
    if "v7" in kind or "7x" in kind:
        return "v7x"
    if "v6" in kind:
        return "v6e"
    if "v5" in kind and ("lite" in kind or "5e" in kind):
        return "v5e"
    return "other"


def _generation_params():
    """Returns (block byte budget, min row-grid steps, vmem_limit_bytes|None)."""
    gen = _detect_generation()
    if gen == "v7x":
        # 2 TCs, 64 MiB VMEM/TC, ~3.2 TB/s HBM: 8 MiB blocks amortize the
        # ~0.35us per-step overhead; 2x(in+out) double-buffered = 32 MiB, so
        # raise the scoped-VMEM cap to 48 MiB (< 64 MiB physical). Force >= 4
        # grid steps so each TC gets >= 2 pipelined iterations.
        return 8 << 20, 4, 48 << 20
    if gen == "v5e":
        # 16 MiB default scoped VMEM: 2 MiB block -> 8 MiB double-buffered.
        return 2 << 20, 1, None
    # v6e / v5p / unknown: >= 32 MiB default scoped VMEM -> 4 MiB blocks.
    return 4 << 20, 1, None


def _suffix_split(shape):
    """Split `shape` into (rows, cols): cols = smallest trailing-dim product
    that reaches 128 lanes (or the whole array), rows = the leading product.
    Reshaping to (rows, cols) is a free contiguous view (no copy)."""
    cols, k = 1, len(shape)
    while k > 0 and cols < _LANES:
        k -= 1
        cols *= shape[k]
    rows = 1
    for d in shape[:k]:
        rows *= d
    return rows, cols


def _choose_tiles(rows, cols, itemsize, sublane_q, tile_bytes, min_steps):
    cols_pad = _round_up(cols, _LANES)
    row_bytes = cols_pad * itemsize
    if row_bytes * sublane_q > tile_bytes and cols > _LANES:
        # Very wide rows: tile the lane dim too (multiple of 128; boundary
        # block is masked by Pallas).
        tile_c = max(_LANES,
                     ((tile_bytes // (sublane_q * itemsize)) // _LANES) * _LANES)
        return min(sublane_q, rows), tile_c
    tile_r = max(sublane_q, (tile_bytes // row_bytes) // sublane_q * sublane_q)
    # v7x only: keep >= min_steps row blocks so both TensorCores stay pipelined.
    if (min_steps > 1 and rows > min_steps * sublane_q
            and rows * row_bytes >= (256 << 10)):
        tile_r = min(tile_r, _round_up(pl.cdiv(rows, min_steps), sublane_q))
    if tile_r >= rows:
        tile_r = rows  # one row-block == full dim (always a legal block shape)
    return tile_r, cols


def _run_2d(x2d, tile_r, tile_c, *, vmem_limit=None, donate=False):
    rows, cols = x2d.shape
    n = rows * cols
    itemsize = jnp.dtype(x2d.dtype).itemsize
    grid = (pl.cdiv(rows, tile_r), pl.cdiv(cols, tile_c))

    cp_kwargs = dict(dimension_semantics=("parallel", "parallel"))
    if vmem_limit is not None:
        cp_kwargs["vmem_limit_bytes"] = int(vmem_limit)
    extra = {}
    if donate:
        extra["input_output_aliases"] = {0: 0}

    return pl.pallas_call(
        _h_swish_kernel,
        out_shape=jax.ShapeDtypeStruct((rows, cols), x2d.dtype),
        grid_spec=pl.GridSpec(
            grid=grid,
            in_specs=[pl.BlockSpec((tile_r, tile_c), lambda i, j: (i, j))],
            out_specs=pl.BlockSpec((tile_r, tile_c), lambda i, j: (i, j)),
        ),
        compiler_params=pltpu.CompilerParams(**cp_kwargs),
        cost_estimate=pl.CostEstimate(
            flops=4 * n, transcendentals=0, bytes_accessed=2 * n * itemsize),
        **extra,
    )(x2d)


def h_swish(x: jax.Array, *, donate: bool = False,
            tile_bytes: int | None = None) -> jax.Array:
    """Elementwise h_swish over an arbitrary-shaped float array (NCHW expected).

    donate=True adds input_output_aliases={0: 0}; pair it with jit buffer
    donation when x is dead after the call. tile_bytes overrides the
    per-generation block budget (testing / tuning only).
    """
    if not jnp.issubdtype(x.dtype, jnp.floating):
        raise TypeError(f"h_swish expects a floating dtype, got {x.dtype}")
    if x.size == 0:
        return x

    n = x.size
    itemsize = jnp.dtype(x.dtype).itemsize
    sublane_q = _sublane_quantum(x.dtype)
    budget, min_steps, vmem_limit = _generation_params()
    if tile_bytes is not None:
        budget = max(int(tile_bytes), sublane_q * _LANES * itemsize)

    if n % _LANES == 0:
        # Lane-perfect fast path: free reshape to a dense (rows, 128) slab.
        rows, cols = n // _LANES, _LANES
    else:
        # Ragged path: free contiguous 2-D view; boundary blocks are masked by
        # Pallas (no jnp.pad / tail-slice HBM round-trips).
        rows, cols = _suffix_split(x.shape)

    tile_r, tile_c = _choose_tiles(rows, cols, itemsize, sublane_q,
                                   budget, min_steps)
    out2d = _run_2d(x.reshape(rows, cols), tile_r, tile_c,
                    vmem_limit=vmem_limit, donate=donate)
    return out2d.reshape(x.shape)


if __name__ == "__main__":
    def ref_fn(v):
        v32 = v.astype(jnp.float32)
        return v32 * jnp.clip(v32 + 3.0, 0.0, 6.0) / 6.0

    key = jax.random.PRNGKey(0)
    k1, k2, k3 = jax.random.split(key, 3)

    # 1) NCHW fast path (total elements % 128 == 0).
    x = jax.random.normal(k1, (2, 4, 16, 16), dtype=jnp.float32) * 4.0
    out = jax.block_until_ready(h_swish(x))
    assert out.shape == x.shape and out.dtype == x.dtype
    assert jnp.allclose(out, ref_fn(x), atol=1e-6, rtol=1e-6)

    # 2) Ragged shape: no pad / tail-slice copies; boundary block masked.
    xr = jax.random.normal(k2, (3, 5, 7, 11), dtype=jnp.float32) * 4.0
    out_r = jax.block_until_ready(h_swish(xr))
    assert out_r.shape == xr.shape and out_r.dtype == xr.dtype
    assert jnp.allclose(out_r, ref_fn(xr), atol=1e-6, rtol=1e-6)

    # 3) Partial last row-block (tiny tile override forces a multi-step grid).
    xp = jax.random.normal(k3, (2, 5, 16, 16), dtype=jnp.float32) * 4.0
    out_p = jax.block_until_ready(h_swish(xp, tile_bytes=4096))
    assert jnp.allclose(out_p, ref_fn(xp), atol=1e-6, rtol=1e-6)

    # 4) bf16 stays bf16 (16-row sublane quantum), fast and ragged paths.
    xb = x.astype(jnp.bfloat16)
    out_b = jax.block_until_ready(h_swish(xb))
    assert out_b.dtype == jnp.bfloat16
    assert jnp.allclose(out_b.astype(jnp.float32), ref_fn(xb),
                        atol=3e-2, rtol=3e-2)
    xbr = xr.astype(jnp.bfloat16)
    out_br = jax.block_until_ready(h_swish(xbr))
    assert out_br.dtype == jnp.bfloat16
    assert jnp.allclose(out_br.astype(jnp.float32), ref_fn(xbr),
                        atol=3e-2, rtol=3e-2)

    # 5) Optional buffer donation (input_output_aliases={0:0}) under jit.
    x_don = x + 0.0
    out_d = jax.block_until_ready(
        jax.jit(lambda v: h_swish(v, donate=True), donate_argnums=0)(x_don))
    assert jnp.allclose(out_d, ref_fn(x), atol=1e-6, rtol=1e-6)

    print("KERNEL_OK")
</pallas_src>

<mosaic_0001>
module attributes {stable_mosaic.version = 11 : i64} {
  func.func @_h_swish_kernel(%arg0: i32, %arg1: i32, %arg2: memref<16x128xf32, #tpu.memory_space<vmem>>, %arg3: memref<16x128xf32, #tpu.memory_space<vmem>>) attributes {dimension_semantics = [#tpu.dimension_semantics<parallel>, #tpu.dimension_semantics<parallel>], iteration_bounds = array<i64: 1, 1>, scalar_prefetch = 0 : i64, scratch_operands = 0 : i64, tpu.core_type = #tpu.core_type<tc>, window_params = [{transform_indices = @transform_0, window_bounds = array<i64: 16, 128>}, {transform_indices = @transform_1, window_bounds = array<i64: 16, 128>}]} {
    %c0 = arith.constant 0 : index
    %c0_0 = arith.constant 0 : index
    %0 = vector.load %arg2[%c0, %c0_0] : memref<16x128xf32, #tpu.memory_space<vmem>>, vector<16x128xf32>
    %cst = arith.constant 3.000000e+00 : f32
    %1 = vector.broadcast %cst : f32 to vector<16x128xf32>
    %2 = arith.addf %0, %1 : vector<16x128xf32>
    %cst_1 = arith.constant 0.000000e+00 : f32
    %cst_2 = arith.constant 6.000000e+00 : f32
    %3 = vector.broadcast %cst_1 : f32 to vector<16x128xf32>
    %4 = arith.maximumf %3, %2 : vector<16x128xf32>
    %5 = vector.broadcast %cst_2 : f32 to vector<16x128xf32>
    %6 = arith.minimumf %5, %4 : vector<16x128xf32>
    %cst_3 = arith.constant 0.166666672 : f32
    %7 = vector.broadcast %cst_3 : f32 to vector<16x128xf32>
    %8 = arith.mulf %6, %7 : vector<16x128xf32>
    %9 = arith.mulf %0, %8 : vector<16x128xf32>
    %c0_4 = arith.constant 0 : index
    %c0_5 = arith.constant 0 : index
    %10 = vector.load %arg3[%c0_4, %c0_5] : memref<16x128xf32, #tpu.memory_space<vmem>>, vector<16x128xf32>
    tpu.vector_store %arg3[%c0_4, %c0_5], %9 {strides = array<i32>} : memref<16x128xf32, #tpu.memory_space<vmem>>, vector<16x128xf32>,
    return
  }
  func.func @transform_0(%arg0: i32, %arg1: i32) -> (i32, i32) {
    %c0_i32 = arith.constant 0 : i32
    return %arg0, %arg1 : i32, i32
  }
  func.func @transform_1(%arg0: i32, %arg1: i32) -> (i32, i32) {
    %c0_i32 = arith.constant 0 : i32
    return %arg0, %arg1 : i32, i32
  }
}

</mosaic_0001>

<bundles_post_ra>
// kernel: tpu_custom_call.1
= control target key start
LH: loop header
LB: loop body
LE: loop exit
PB: predicated region body
PF: predicated region fallthrough
CT: control target
= control target key end

     0   :  { %6 = vsyncpa [#allocation3], 0  ;;  %s150_s0 = inlined_call_operand.hbm [shape: f32[16,128], index: 0, kind: input, shape index: {}]   ;;  %s151_s1 = inlined_call_operand.hbm [shape: f32[16,128], index: 1, kind: output, shape index: {}]  }
   0x1   :  { %7 = vsyncpa [#allocation4], 0  ;;  %s106_s6 = smov [#allocation2]   ;;  %s58_s10 = scalar_lea.hbm %s150_s0, 256 }
   0x2   :  { %s13_s7 = sshll.u32 %s106_s6, 4  ;;  %p59_p0 = scmp.ne.s32.totalorder %s150_s0, %s58_s10  ;;  %s14_s7 = int_to_ptr.vmem [resolvable:$true] %s13_s7 }
   0x3   :  { %p62_p1 = scmp.lt.u32.totalorder %s58_s10, %s150_s0 }
   0x5   :  { %p64_p2 = pnand %p62_p1, %p59_p0 }
   0x7   :  { %67 = shalt.err (!%p64_p2)
}
   0x8   :  { %s68_s15 = scalar_lea.vmem %s14_s7, 256  ;;  %p73_p4 = scmp.lt.s32.totalorder %s14_s7, %s14_s7 }
   0x9   :  { %p69_p3 = scmp.ne.s32.totalorder %s14_s7, %s68_s15  ;;  %p74_p5 = scmp.lt.s32.totalorder %s68_s15, %s68_s15 }
   0xb   :  { %p75_p6 = por %p74_p5, %p73_p4 }
   0xd   :  { %p76_p7 = pnand %p75_p6, %p69_p3 }
   0xf   :  { %79 = shalt.err (!%p76_p7)
}
  0x10   :  { %s107_s16 = smov 128   ;;  %s108_s17 = smov 8  }
  0x11   :  { %19 = dma.hbm_to_vmem [thread:$0]  %s150_s0, 256, %s14_s7, [#allocation3], %s107_s16, %s107_s16, %s108_s17  }
  0x12   :  { %102 = dma.done.wait [#allocation3], 256  }
  0x13   :  { %103 = vsyncadd [#allocation3], 4294967040  ;;  %v23_v0 = vld [vmem:[#allocation2] sm:$0xff]  ;;  %v24_v1 = vld [vmem:[#allocation2 + $0x8] sm:$0xff]  ;;  %s109_s20 = smov [#allocation5]  }
  0x14   :  { %v25_v2 = vadd.f32 3.0, %v23_v0  ;;  %v26_v3 = vadd.f32 3.0, %v24_v1  ;;  %s42_s21 = sshll.u32 %s109_s20, 4  ;;  %s43_s21 = int_to_ptr.vmem [resolvable:$true] %s42_s21 }
  0x15   :  { %s80_s0 = scalar_lea.vmem %s43_s21, 256  ;;  %p85_p9 = scmp.lt.s32.totalorder %s43_s21, %s43_s21 }
  0x16   :  { %v27_v4 = vmax.f32 %v25_v2, 0.0  ;;  %v28_v5 = vmax.f32 %v26_v3, 0.0  ;;  %p81_p8 = scmp.ne.s32.totalorder %s43_s21, %s80_s0  ;;  %p86_p10 = scmp.lt.s32.totalorder %s80_s0, %s80_s0 }
  0x18   :  { %v29_v6 = vmin.f32 %v27_v4, 6.0  ;;  %v30_v7 = vmin.f32 %v28_v5, 6.0  ;;  %p87_p11 = por %p86_p10, %p85_p9 }
  0x1a   :  { %v31_v8 = vmul.f32 0.16666667, %v29_v6  ;;  %v32_v9 = vmul.f32 0.16666667, %v30_v7  ;;  %p88_p12 = pnand %p87_p11, %p81_p8 }
  0x1c   :  { %v33_v10 = vmul.f32 %v31_v8, %v23_v0  ;;  %v34_v11 = vmul.f32 %v32_v9, %v24_v1 }
  0x1e   :  { %35 = vst [vmem:[#allocation5] sm:$0xff] %v33_v10  ;;  %36 = vst [vmem:[#allocation5 + $0x8] sm:$0xff] %v34_v11 }
  0x1f   :  { %91 = shalt.err (!%p88_p12)
}
  0x20   :  { %s92_s24 = scalar_lea.hbm %s151_s1, 256 }
  0x21   :  { %p93_p13 = scmp.ne.s32.totalorder %s151_s1, %s92_s24  ;;  %p96_p0 = scmp.lt.u32.totalorder %s92_s24, %s151_s1 }
  0x23   :  { %p98_p1 = pnand %p96_p0, %p93_p13 }
  0x25   :  { %101 = shalt.err (!%p98_p1)
}
  0x26   :  { %48 = dma.vmem_to_hbm [thread:$0]  %s43_s21, 256, %s151_s1, [#allocation4], %s107_s16, %s107_s16, %s108_s17  }
  0x27   :  { %104 = dma.done.wait [#allocation4], 256  }
  0x28   :  { %105 = vsyncadd [#allocation4], 4294967040 }
  0x29   :  { %52 = vsyncpa [#allocation3], 1 }
  0x2a   :  { %53 = vsyncpa [#allocation4], 1 }

</bundles_post_ra>
